<compile_context>
chip_gen: v5e
topology: v5e:2x2
jax: 0.10.0
libtpu: 0.0.40
codegen_flags: <defaults>
</compile_context>

<pallas_src>
import functools

import jax
import jax.numpy as jnp
from jax import lax
from jax.experimental import pallas as pl
from jax.experimental.pallas import tpu as pltpu


# ----------------------------- dispatch knobs --------------------------------
_RESIDENT_TABLE_BYTES = 14 * 1024 * 1024   # keep 2x table well under 64 MiB (v7x)
_ONEHOT_MAX_VOCAB = 4096                   # one-hot overfetch factor is V
_TOKENS_PER_BLOCK = 128                    # tokens gathered per grid step
_DMA_WINDOW = 8                            # in-flight row DMAs (path B)
_LANES = 128                               # vreg lane width


# ----------------------------- Path A: one-hot MXU ---------------------------
def _embed_onehot_kernel(ids_ref, table_ref, out_ref, *, pack):
    # ids_ref:   (R, pack)   int32 VMEM, R = tokens_per_block // pack
    # table_ref: (V, D)      VMEM (whole table, resident across the grid)
    # out_ref:   (R, pack*D) VMEM (lane-dense when pack*D == 128)
    r = ids_ref.shape[0]
    v = table_ref.shape[0]
    ids = ids_ref[...]                                    # (R, pack)
    tbl = table_ref[...]                                  # (V, D)
    # Hoisted once per block (JAX does not CSE broadcast_in_dim).
    iota = lax.broadcasted_iota(jnp.int32, (r, v), 1)     # (R, V)
    pieces = []
    for p in range(pack):
        onehot = (iota == ids[:, p:p + 1]).astype(tbl.dtype)   # exact 0/1
        pieces.append(
            jnp.dot(onehot, tbl, preferred_element_type=jnp.float32))
    res = pieces[0] if pack == 1 else jnp.concatenate(pieces, axis=-1)
    out_ref[...] = res.astype(out_ref.dtype)


def _embedding_onehot(flat_ids, table, block_tokens, pack):
    n_pad = flat_ids.shape[0]
    v, d = table.shape
    itemsize = int(table.dtype.itemsize)
    rows = n_pad // pack
    block_rows = block_tokens // pack

    cost = pl.CostEstimate(
        flops=2 * n_pad * v * d,
        transcendentals=0,
        bytes_accessed=n_pad * 4 + v * d * itemsize + n_pad * d * itemsize,
    )
    vmem_need = (
        2 * v * d * itemsize                       # resident table (2 bufs worst case)
        + 4 * block_tokens * (d * itemsize + 4)    # ids + out double buffers
        + 2 * block_rows * v * 4                   # iota + one-hot live values
        + (2 << 20))
    vmem_limit = int(min(max(vmem_need, 16 << 20), 64 << 20))

    kernel = functools.partial(_embed_onehot_kernel, pack=pack)
    out = pl.pallas_call(
        kernel,
        out_shape=jax.ShapeDtypeStruct((rows, pack * d), table.dtype),
        grid_spec=pltpu.PrefetchScalarGridSpec(
            num_scalar_prefetch=0,
            grid=(rows // block_rows,),
            in_specs=[
                pl.BlockSpec((block_rows, pack), lambda i: (i, 0)),
                pl.BlockSpec((v, d), lambda i: (0, 0)),   # table VMEM-resident
            ],
            out_specs=pl.BlockSpec((block_rows, pack * d), lambda i: (i, 0)),
        ),
        compiler_params=pltpu.CompilerParams(
            dimension_semantics=("parallel",),
            vmem_limit_bytes=vmem_limit,
        ),
        cost_estimate=cost,
    )(flat_ids.reshape(rows, pack), table)
    # Row-major reshape undoes the lane packing: out[r, p*D + j] == table[ids[r*P+p], j].
    return out.reshape(n_pad, d)


# ----------------------------- Path B: batched DMA gather --------------------
def _embed_dma_kernel(ids_ref, table_hbm, out_ref, buf, sems, *, block_tokens):
    # ids_ref:   (N_pad,) int32 SMEM (scalar prefetch)
    # table_hbm: (V, D)   HBM ref (memory_space=pl.ANY)
    # out_ref:   (T, D)   VMEM output block
    # buf:       (T, D)   VMEM staging buffer
    # sems:      (_DMA_WINDOW,) DMA semaphores
    base = pl.program_id(0) * block_tokens

    def _start(t):
        row = ids_ref[base + t]
        pltpu.make_async_copy(
            table_hbm.at[pl.ds(row, 1)],
            buf.at[pl.ds(t, 1)],
            sems.at[t % _DMA_WINDOW],
        ).start()

    def _wait(t):
        # Source slice only needs the right shape for the wait descriptor.
        pltpu.make_async_copy(
            table_hbm.at[pl.ds(0, 1)],
            buf.at[pl.ds(t, 1)],
            sems.at[t % _DMA_WINDOW],
        ).wait()

    # Prime a window of in-flight row copies.
    @pl.loop(0, _DMA_WINDOW)
    def _(t):
        _start(t)

    # Steady state: retire the oldest copy, reuse its slot for the next row.
    @pl.loop(_DMA_WINDOW, block_tokens)
    def _(t):
        _wait(t - _DMA_WINDOW)
        _start(t)

    # Drain the tail.
    @pl.loop(block_tokens - _DMA_WINDOW, block_tokens)
    def _(t):
        _wait(t)

    out_ref[...] = buf[...]


def _embedding_dma(flat_ids, table, block_tokens):
    n_pad = flat_ids.shape[0]
    v, d = table.shape
    itemsize = int(table.dtype.itemsize)
    cost = pl.CostEstimate(
        flops=0,
        transcendentals=0,
        bytes_accessed=n_pad * 4 + 2 * n_pad * d * itemsize,
    )
    kernel = functools.partial(_embed_dma_kernel, block_tokens=block_tokens)
    return pl.pallas_call(
        kernel,
        out_shape=jax.ShapeDtypeStruct((n_pad, d), table.dtype),
        grid_spec=pltpu.PrefetchScalarGridSpec(
            num_scalar_prefetch=1,
            grid=(n_pad // block_tokens,),
            in_specs=[pl.BlockSpec(memory_space=pl.ANY)],   # table stays in HBM
            out_specs=pl.BlockSpec((block_tokens, d), lambda i, ids: (i, 0)),
            scratch_shapes=[
                pltpu.VMEM((block_tokens, d), table.dtype),
                pltpu.SemaphoreType.DMA((_DMA_WINDOW,)),
            ],
        ),
        compiler_params=pltpu.CompilerParams(
            dimension_semantics=("parallel",),
        ),
        cost_estimate=cost,
    )(flat_ids, table)


# ----------------------------- public wrapper --------------------------------
def embedding_lookup(ids, table, *, block_tokens=_TOKENS_PER_BLOCK, impl="auto"):
    """ids: int array (any leading shape); table: (V, D) -> (..., D)."""
    v, d = table.shape
    lead_shape = ids.shape

    # Clamp ids: an out-of-range id must never drive a DMA / gather index.
    flat_ids = jnp.clip(ids.reshape(-1).astype(jnp.int32), 0, v - 1)
    n = flat_ids.shape[0]

    # Lane-pack factor: pack P tokens per output row so the stored block is a
    # full 128-lane slab when D < 128 (store-BW lever).
    pack = _LANES // d if (d < _LANES and _LANES % d == 0) else 1

    # Token block: multiple of 8*pack (sublane constraint on the packed rows),
    # and at least the DMA window.
    quantum = 8 * pack
    block_tokens = max(block_tokens, _DMA_WINDOW, quantum)
    block_tokens = ((block_tokens + quantum - 1) // quantum) * quantum
    n_pad = ((n + block_tokens - 1) // block_tokens) * block_tokens
    if n_pad != n:
        flat_ids = jnp.pad(flat_ids, (0, n_pad - n))      # padded ids -> row 0

    table_bytes = v * d * int(table.dtype.itemsize)
    if impl == "auto":
        impl = ("onehot"
                if (table_bytes <= _RESIDENT_TABLE_BYTES and v <= _ONEHOT_MAX_VOCAB)
                else "dma")

    if impl == "onehot":
        out = _embedding_onehot(flat_ids, table, block_tokens, pack)
    elif impl == "dma":
        out = _embedding_dma(flat_ids, table, block_tokens)
    else:
        raise ValueError(f"unknown impl: {impl}")

    return out[:n].reshape(*lead_shape, d)


def init_embedding_params(key, vocab_size, ninp):
    """nn.Embedding defaults: N(0,1) init, row 0 zeroed (padding_idx=0)."""
    w = jax.random.normal(key, (vocab_size, ninp), dtype=jnp.float32)
    w = w.at[0].set(0.0)
    return w


if __name__ == "__main__":
    vocab_size = 64
    ninp = 32
    batch, seq = 2, 8

    key = jax.random.PRNGKey(0)
    k_w, k_ids = jax.random.split(key)

    table = init_embedding_params(k_w, vocab_size, ninp)
    ids = jax.random.randint(k_ids, (batch, seq), 0, vocab_size, dtype=jnp.int32)
    ids = ids.at[0, 0].set(0)   # ensure a padding token is present

    ref = table[ids]

    # Path A (auto-dispatched for this small table): VMEM-resident one-hot MXU
    # gather with lane-dense (pack=4) output blocks.
    out = jax.block_until_ready(embedding_lookup(ids, table))
    assert out.shape == (batch, seq, ninp)
    assert jnp.allclose(out, ref), "onehot path mismatch vs reference gather"

    # Path B (forced): batched HBM row-DMA gather (large-table fallback).
    out_dma = jax.block_until_ready(embedding_lookup(ids, table, impl="dma"))
    assert jnp.allclose(out_dma, ref), "dma path mismatch vs reference gather"

    print("KERNEL_OK")
</pallas_src>

<mosaic_0001>
module attributes {stable_mosaic.version = 11 : i64} {
  func.func @_embed_onehot_kernel(%arg0: i32, %arg1: memref<32x4xi32, #tpu.memory_space<vmem>>, %arg2: memref<64x32xf32, #tpu.memory_space<vmem>>, %arg3: memref<32x128xf32, #tpu.memory_space<vmem>>) attributes {dimension_semantics = [#tpu.dimension_semantics<parallel>], iteration_bounds = array<i64: 1>, scalar_prefetch = 0 : i64, scratch_operands = 0 : i64, tpu.core_type = #tpu.core_type<tc>, window_params = [{transform_indices = @transform_0, window_bounds = array<i64: 32, 4>}, {pipeline_mode = #tpu.pipeline_mode<synchronous>, transform_indices = @transform_1, window_bounds = array<i64: 64, 32>}, {transform_indices = @transform_2, window_bounds = array<i64: 32, 128>}]} {
    %c0 = arith.constant 0 : index
    %c0_0 = arith.constant 0 : index
    %0 = vector.load %arg1[%c0, %c0_0] : memref<32x4xi32, #tpu.memory_space<vmem>>, vector<32x4xi32>
    %c0_1 = arith.constant 0 : index
    %c0_2 = arith.constant 0 : index
    %1 = vector.load %arg2[%c0_1, %c0_2] : memref<64x32xf32, #tpu.memory_space<vmem>>, vector<64x32xf32>
    %2 = tpu.iota {dimensions = array<i32: 1>} : vector<32x64xi32>
    %3 = vector.extract_strided_slice %0 {offsets = [0, 0], sizes = [32, 1], strides = [1, 1]} : vector<32x4xi32> to vector<32x1xi32>
    %4 = vector.broadcast %3 : vector<32x1xi32> to vector<32x64xi32>
    %5 = arith.cmpi eq, %2, %4 : vector<32x64xi32>
    %6 = arith.extui %5 : vector<32x64xi1> to vector<32x64xi32>
    %7 = arith.sitofp %6 : vector<32x64xi32> to vector<32x64xf32>
    %cst = arith.constant dense<0.000000e+00> : vector<32x32xf32>
    %8 = tpu.matmul %7, %1, %cst {dimension_numbers = #tpu.dot_dimension_numbers<[1], [0], [0], [1], [0, 0, 1, 1], [], []>} : vector<32x64xf32>, vector<64x32xf32>, vector<32x32xf32> -> vector<32x32xf32>
    %9 = vector.extract_strided_slice %0 {offsets = [0, 1], sizes = [32, 1], strides = [1, 1]} : vector<32x4xi32> to vector<32x1xi32>
    %10 = vector.broadcast %9 : vector<32x1xi32> to vector<32x64xi32>
    %11 = arith.cmpi eq, %2, %10 : vector<32x64xi32>
    %12 = arith.extui %11 : vector<32x64xi1> to vector<32x64xi32>
    %13 = arith.sitofp %12 : vector<32x64xi32> to vector<32x64xf32>
    %cst_3 = arith.constant dense<0.000000e+00> : vector<32x32xf32>
    %14 = tpu.matmul %13, %1, %cst_3 {dimension_numbers = #tpu.dot_dimension_numbers<[1], [0], [0], [1], [0, 0, 1, 1], [], []>} : vector<32x64xf32>, vector<64x32xf32>, vector<32x32xf32> -> vector<32x32xf32>
    %15 = vector.extract_strided_slice %0 {offsets = [0, 2], sizes = [32, 1], strides = [1, 1]} : vector<32x4xi32> to vector<32x1xi32>
    %16 = vector.broadcast %15 : vector<32x1xi32> to vector<32x64xi32>
    %17 = arith.cmpi eq, %2, %16 : vector<32x64xi32>
    %18 = arith.extui %17 : vector<32x64xi1> to vector<32x64xi32>
    %19 = arith.sitofp %18 : vector<32x64xi32> to vector<32x64xf32>
    %cst_4 = arith.constant dense<0.000000e+00> : vector<32x32xf32>
    %20 = tpu.matmul %19, %1, %cst_4 {dimension_numbers = #tpu.dot_dimension_numbers<[1], [0], [0], [1], [0, 0, 1, 1], [], []>} : vector<32x64xf32>, vector<64x32xf32>, vector<32x32xf32> -> vector<32x32xf32>
    %21 = vector.extract_strided_slice %0 {offsets = [0, 3], sizes = [32, 1], strides = [1, 1]} : vector<32x4xi32> to vector<32x1xi32>
    %22 = vector.broadcast %21 : vector<32x1xi32> to vector<32x64xi32>
    %23 = arith.cmpi eq, %2, %22 : vector<32x64xi32>
    %24 = arith.extui %23 : vector<32x64xi1> to vector<32x64xi32>
    %25 = arith.sitofp %24 : vector<32x64xi32> to vector<32x64xf32>
    %cst_5 = arith.constant dense<0.000000e+00> : vector<32x32xf32>
    %26 = tpu.matmul %25, %1, %cst_5 {dimension_numbers = #tpu.dot_dimension_numbers<[1], [0], [0], [1], [0, 0, 1, 1], [], []>} : vector<32x64xf32>, vector<64x32xf32>, vector<32x32xf32> -> vector<32x32xf32>
    %27 = tpu.concatenate %8, %14, %20, %26 in 1 : vector<32x32xf32>, vector<32x32xf32>, vector<32x32xf32>, vector<32x32xf32> -> vector<32x128xf32>
    %c0_6 = arith.constant 0 : index
    %c0_7 = arith.constant 0 : index
    %28 = vector.load %arg3[%c0_6, %c0_7] : memref<32x128xf32, #tpu.memory_space<vmem>>, vector<32x128xf32>
    tpu.vector_store %arg3[%c0_6, %c0_7], %27 {strides = array<i32>} : memref<32x128xf32, #tpu.memory_space<vmem>>, vector<32x128xf32>,
    return
  }
  func.func @transform_0(%arg0: i32) -> (i32, i32) {
    %c0_i32 = arith.constant 0 : i32
    %c0_i32_0 = arith.constant 0 : i32
    return %arg0, %c0_i32 : i32, i32
  }
  func.func @transform_1(%arg0: i32) -> (i32, i32) {
    %c0_i32 = arith.constant 0 : i32
    %c0_i32_0 = arith.constant 0 : i32
    %c0_i32_1 = arith.constant 0 : i32
    return %c0_i32, %c0_i32_0 : i32, i32
  }
  func.func @transform_2(%arg0: i32) -> (i32, i32) {
    %c0_i32 = arith.constant 0 : i32
    %c0_i32_0 = arith.constant 0 : i32
    return %arg0, %c0_i32 : i32, i32
  }
}

</mosaic_0001>

<bundles_post_ra>
// kernel: tpu_custom_call.1
= control target key start
LH: loop header
LB: loop body
LE: loop exit
PB: predicated region body
PF: predicated region fallthrough
CT: control target
= control target key end

     0   :  { %v453_v1 = vmov 2   ;;  %v454_v2 = vmov 1   ;;  %s570_s0 = inlined_call_operand.vmem [shape: s32[32,4], index: 0, kind: input, shape index: {}]   ;;  %s571_s1 = inlined_call_operand.vmem [shape: f32[64,32], index: 1, kind: input, shape index: {}]   ;;  %s572_s2 = inlined_call_operand.hbm [shape: f32[32,128], index: 2, kind: output, shape index: {}]  }
   0x1   :  { %v482_v0 = vld [vmem:[%s570_s0] sm:$0xff]  ;;  %414 = vset.pattern.permute.xlu0 %v453_v1  ;;  %416 = vset.pattern.permute.xlu1 %v454_v2 }
   0x2   :  { %7 = vsyncpa [#allocation3], 0  ;;  %93 = vperm.xlu1 %416, %v482_v0   ;;  %158 = vperm.xlu0 %414, %v482_v0   ;;  %v13_v3 = vld [vmem:[%s570_s0 + $0x8] sm:$0xff]  ;;  %v455_v4 = vmov 3   ;;  %v23_v5 = vld [vmem:[%s571_s1 + $0x38] sm:$0xff]  ;;  %v456_v14 = vmov 0   ;;  %v24_v18 = vlaneseq }
   0x3   :  { %418 = vset.pattern.permute.xlu2 %v455_v4  ;;  %v22_v6 = vld [vmem:[%s571_s1 + $0x30] sm:$0xff]  ;;  %136 = vmatpush.msra.mxu1 %v23_v5  ;;  %v21_v7 = vld [vmem:[%s571_s1 + $0x28] sm:$0xff]  ;;  %v20_v8 = vld [vmem:[%s571_s1 + $0x20] sm:$0xff]  ;;  %vm50_vm0 = vcmask 523264   ;;  %v457_v23 = vmov 0.0   ;;  %s460_s5 = smov 96  }
   0x4   :  { %226 = vperm.xlu2 %418, %v13_v3   ;;  %201 = vmatpush.msra.mxu2 %v23_v5  ;;  %v19_v9 = vld [vmem:[%s571_s1 + $0x18] sm:$0xff]  ;;  %v18_v10 = vld [vmem:[%s571_s1 + $0x10] sm:$0xff]  ;;  %v17_v11 = vld [vmem:[%s571_s1 + $0x8] sm:$0xff]  ;;  %v521_v20 = vand.u32 127, %v24_v18  ;;  %s461_s6 = smov [#allocation2]   ;;  %s359_s10 = sshll.u32 %s572_s2, 4  ;;  %s360_s10 = int_to_ptr.hbm [resolvable:$true] %s359_s10 }
   0x5   :  { %266 = vmatpush.msra.mxu3 %v23_v5  ;;  %71 = vmatpush.msra.mxu0 %v23_v5  ;;  %v14_v12 = vld [vmem:[%s570_s0 + $0x10] sm:$0xff]  ;;  %v15_v13 = vld [vmem:[%s570_s0 + $0x18] sm:$0xff]  ;;  %v16_v15 = vld [vmem:[%s571_s1] sm:$0xff]  ;;  %s458_s0 = smov 32   ;;  %s459_s1 = smov 64  }
   0x6   :  { %137 = vmatpush.msra.mxu1 %v22_v6  ;;  %202 = vmatpush.msra.mxu2 %v22_v6  ;;  %s357_s7 = sshll.u32 %s461_s6, 4  ;;  %s462_s11 = smov 128   ;;  %s358_s7 = int_to_ptr.vmem [resolvable:$true] %s357_s7 }
   0x7   :  { %267 = vmatpush.msra.mxu3 %v22_v6  ;;  %72 = vmatpush.msra.mxu0 %v22_v6  ;;  %s463_s12 = smov 8  }
   0x8   :  { %138 = vmatpush.msra.mxu1 %v21_v7  ;;  %203 = vmatpush.msra.mxu2 %v21_v7 }
   0x9   :  { %268 = vmatpush.msra.mxu3 %v21_v7  ;;  %73 = vmatpush.msra.mxu0 %v21_v7 }
   0xa   :  { %417 = vset.pattern.permute.xlu1 %v453_v1  ;;  %415 = vset.pattern.permute.xlu0 %v455_v4 }
   0xb   :  { %161 = vperm.xlu1 %417, %v13_v3   ;;  %223 = vperm.xlu0 %415, %v482_v0  }
   0xc   :  { %419 = vset.pattern.permute.xlu2 %v454_v2  ;;  %139 = vmatpush.msra.mxu1 %v20_v8 }
   0xd   :  { %96 = vperm.xlu2 %419, %v13_v3   ;;  %204 = vmatpush.msra.mxu2 %v20_v8 }
   0xe   :  { %140 = vmatpush.msra.mxu1 %v19_v9  ;;  %269 = vmatpush.msra.mxu3 %v20_v8 }
   0xf   :  { %205 = vmatpush.msra.mxu2 %v19_v9  ;;  %74 = vmatpush.msra.mxu0 %v20_v8 }
  0x10   :  { %141 = vmatpush.msra.mxu1 %v18_v10  ;;  %270 = vmatpush.msra.mxu3 %v19_v9 }
  0x11   :  { %206 = vmatpush.msra.mxu2 %v18_v10  ;;  %75 = vmatpush.msra.mxu0 %v19_v9 }
  0x12   :  { %142 = vmatpush.msra.mxu1 %v17_v11  ;;  %271 = vmatpush.msra.mxu3 %v18_v10 }
  0x13   :  { %164 = vperm.xlu1 %417, %v14_v12   ;;  %421 = vset.pattern.permute.xlu0 %v454_v2 }
  0x14   :  { %99 = vperm.xlu0 %421, %v14_v12   ;;  %207 = vmatpush.msra.mxu2 %v17_v11 }
  0x15   :  { %420 = vset.pattern.permute.xlu2 %v455_v4  ;;  %272 = vmatpush.msra.mxu3 %v17_v11 }
  0x16   :  { %229 = vperm.xlu2 %420, %v14_v12   ;;  %76 = vmatpush.msra.mxu0 %v18_v10 }
  0x17   :  { %143 = vmatpush.msra.mxu1 %v16_v15  ;;  %208 = vmatpush.msra.mxu2 %v16_v15 }
  0x18   :  { %77 = vmatpush.msra.mxu0 %v17_v11  ;;  %273 = vmatpush.msra.mxu3 %v16_v15 }
  0x1a   :  { %78 = vmatpush.msra.mxu0 %v16_v15 }
  0x1b   :  { %167 = vperm.xlu1 %417, %v15_v13  }
  0x1c   :  { %424 = vset.pattern.permute.xlu0 %v456_v14 }
  0x1d   :  { %30 = vperm.xlu0 %424, %v13_v3  }
  0x1e   :  { %232 = vperm.xlu2 %420, %v15_v13  }
  0x23   :  { %422 = vset.pattern.permute.xlu1 %v454_v2 }
  0x24   :  { %102 = vperm.xlu1 %422, %v15_v13  }
  0x25   :  { %426 = vset.pattern.permute.xlu0 %v455_v4 }
  0x26   :  { %423 = vset.pattern.permute.xlu2 %v456_v14 }
  0x27   :  { %27 = vperm.xlu2 %423, %v482_v0  }
  0x2c   :  { %425 = vset.pattern.permute.xlu1 %v456_v14 }
  0x2d   :  { %33 = vperm.xlu1 %425, %v14_v12  }
  0x2f   :  { %36 = vperm.xlu2 %423, %v15_v13  }
  0x5e   :  { %v227_v16 = vpop.permute.xlu2 %226 }
  0x5f   :  { %vm235_vm7 = vcmp.eq.s32.totalorder %v521_v20, %v227_v16 }
  0x60   :  { %v396_v36 = vsel %vm235_vm7, 1.0, %v457_v23 }
  0x67   :  { %v97_v17 = vpop.permute.xlu2 %96 }
  0x68   :  { %vm105_vm3 = vcmp.eq.s32.totalorder %v521_v20, %v97_v17 }
  0x69   :  { %v380_v27 = vsel %vm105_vm3, 1.0, %v457_v23  ;;  %vm344_vm3 = vcmask 785408  }
  0x70   :  { %v230_v19 = vpop.permute.xlu2 %229 }
  0x71   :  { %vm236_vm10 = vcmp.eq.s32.totalorder %v521_v20, %v230_v19 }
  0x72   :  { %v397_v39 = vsel %vm236_vm10, 1.0, %v457_v23 }
  0x74   :  { %v94_v21 = vpop.permute.xlu1 %93  ;;  %v159_v22 = vpop.permute.xlu0 %158 }
  0x75   :  { %vm104_vm1 = vcmp.eq.s32.totalorder %v521_v20, %v94_v21  ;;  %vm169_vm2 = vcmp.eq.s32.totalorder %v521_v20, %v159_v22 }
  0x76   :  { %v379_v24 = vsel %vm104_vm1, 1.0, %v457_v23  ;;  %v387_v25 = vsel %vm169_vm2, 1.0, %v457_v23  ;;  %vm335_vm2 = vcmask 261120  }
  0x77   :  { %383 = vmatmul.msk.f32.vlgmr.msra.gmra.mxu1 %vm50_vm0, %v379_v24  ;;  %391 = vmatmul.msk.f32.vlgmr.msra.gmra.mxu2 %vm50_vm0, %v387_v25 }
  0x78   :  { %v233_v26 = vpop.permute.xlu2 %232 }
  0x79   :  { %vm237_vm13 = vcmp.eq.s32.totalorder %v521_v20, %v233_v26 }
  0x7a   :  { %v398_v45 = vsel %vm237_vm13, 1.0, %v457_v23 }
  0x7d   :  { %v162_v28 = vpop.permute.xlu1 %161  ;;  %v224_v29 = vpop.permute.xlu0 %223 }
  0x7e   :  { %vm170_vm4 = vcmp.eq.s32.totalorder %v521_v20, %v162_v28  ;;  %vm234_vm5 = vcmp.eq.s32.totalorder %v521_v20, %v224_v29 }
  0x7f   :  { %v388_v30 = vsel %vm170_vm4, 1.0, %v457_v23  ;;  %v395_v31 = vsel %vm234_vm5, 1.0, %v457_v23  ;;  %384 = vmatmul.msk.f32.gmra.mxu1 %vm50_vm0, %v380_v27 }
  0x80   :  { %392 = vmatmul.msk.f32.gmra.mxu2 %vm50_vm0, %v388_v30  ;;  %399 = vmatmul.msk.f32.vlgmr.msra.gmra.mxu3 %vm50_vm0, %v395_v31 }
  0x81   :  { %v28_v32 = vpop.permute.xlu2 %27 }
  0x82   :  { %vm38_vm6 = vcmp.eq.s32.totalorder %v521_v20, %v28_v32 }
  0x83   :  { %v371_v33 = vsel %vm38_vm6, 1.0, %v457_v23 }
  0x84   :  { %375 = vmatmul.msk.f32.vlgmr.msra.gmra.mxu0 %vm50_vm0, %v371_v33 }
  0x85   :  { %v165_v34 = vpop.permute.xlu1 %164 }
  0x86   :  { %vm171_vm8 = vcmp.eq.s32.totalorder %v521_v20, %v165_v34  ;;  %v100_v35 = vpop.permute.xlu0 %99 }
  0x87   :  { %v389_v37 = vsel %vm171_vm8, 1.0, %v457_v23  ;;  %vm106_vm9 = vcmp.eq.s32.totalorder %v521_v20, %v100_v35 }
  0x88   :  { %393 = vmatmul.msk.f32.gmra.mxu2 %vm50_vm0, %v389_v37  ;;  %400 = vmatmul.msk.f32.gmra.mxu3 %vm50_vm0, %v396_v36  ;;  %v381_v38 = vsel %vm106_vm9, 1.0, %v457_v23 }
  0x89   :  { %385 = vmatmul.msk.f32.gmra.mxu1 %vm50_vm0, %v381_v38  ;;  %v37_v49 = vpop.permute.xlu2 %36 }
  0x8a   :  { %vm41_vm1 = vcmp.eq.s32.totalorder %v521_v20, %v37_v49 }
  0x8b   :  { %v374_v50 = vsel %vm41_vm1, 1.0, %v457_v23 }
  0x8d   :  { %v168_v40 = vpop.permute.xlu1 %167 }
  0x8e   :  { %vm172_vm11 = vcmp.eq.s32.totalorder %v521_v20, %v168_v40 }
  0x8f   :  { %v390_v41 = vsel %vm172_vm11, 1.0, %v457_v23  ;;  %v31_v42 = vpop.permute.xlu0 %30 }
  0x90   :  { %394 = vmatmul.msk.f32.gmra.mxu2 %vm50_vm0, %v390_v41  ;;  %401 = vmatmul.msk.f32.gmra.mxu3 %vm50_vm0, %v397_v39  ;;  %vm39_vm12 = vcmp.eq.s32.totalorder %v521_v20, %v31_v42 }
  0x91   :  { %v372_v43 = vsel %vm39_vm12, 1.0, %v457_v23 }
  0x92   :  { %376 = vmatmul.msk.f32.gmra.mxu0 %vm50_vm0, %v372_v43 }
  0x96   :  { %v103_v44 = vpop.permute.xlu1 %102 }
  0x97   :  { %vm107_vm14 = vcmp.eq.s32.totalorder %v521_v20, %v103_v44 }
  0x98   :  { %v382_v46 = vsel %vm107_vm14, 1.0, %v457_v23  ;;  %402 = vmatmul.msk.f32.gmra.mxu3 %vm50_vm0, %v398_v45 }
  0x99   :  { %386 = vmatmul.msk.f32.gmra.mxu1 %vm50_vm0, %v382_v46 }
  0x9f   :  { %v34_v47 = vpop.permute.xlu1 %33 }
  0xa0   :  { %vm40_vm15 = vcmp.eq.s32.totalorder %v521_v20, %v34_v47 }
  0xa1   :  { %v373_v48 = vsel %vm40_vm15, 1.0, %v457_v23 }
  0xa2   :  { %377 = vmatmul.msk.f32.gmra.mxu0 %vm50_vm0, %v373_v48 }
  0xaa   :  { %378 = vmatmul.msk.f32.gmra.mxu0 %vm50_vm0, %v374_v50 }
  0xf4   :  { %v145_v51 = vpop.f32.mrf.mxu1 }
  0xf5   :  { %291 = vrot.lane.b32.xlu1 %v145_v51, %s458_s0 }
  0xfa   :  { %v210_v52 = vpop.f32.mrf.mxu2 }
  0xfb   :  { %307 = vrot.lane.b32.xlu2 %v210_v52, %s459_s1 }
  0xfc   :  { %v148_v53 = vpop.f32.mrf.mxu1 }
 0x101   :  { %v80_v0 = vpop.f32.mrf.mxu0 }
 0x103   :  { %v213_v54 = vpop.f32.mrf.mxu2  ;;  %v275_v55 = vpop.f32.mrf.mxu3  ;;  %293 = vrot.lane.b32.xlu2 %v148_v53, %s458_s0 }
 0x104   :  { %323 = vrot.lane.b32.xlu0 %v275_v55, %s460_s5 }
 0x106   :  { %v151_v58 = vpop.f32.mrf.mxu1 }
 0x10b   :  { %v216_v56 = vpop.f32.mrf.mxu2  ;;  %v278_v57 = vpop.f32.mrf.mxu3 }
 0x10c   :  { %311 = vrot.lane.b32.xlu1 %v216_v56, %s459_s1  ;;  %309 = vrot.lane.b32.xlu0 %v213_v54, %s459_s1 }
 0x10f   :  { %v83_v7 = vpop.f32.mrf.mxu0 }
 0x113   :  { %v219_v59 = vpop.f32.mrf.mxu2  ;;  %v281_v60 = vpop.f32.mrf.mxu3 }
 0x114   :  { %313 = vrot.lane.b32.xlu2 %v219_v59, %s459_s1  ;;  %295 = vrot.lane.b32.xlu0 %v151_v58, %s458_s0 }
 0x116   :  { %v154_v61 = vpop.f32.mrf.mxu1 }
 0x117   :  { %297 = vrot.lane.b32.xlu1 %v154_v61, %s458_s0 }
 0x11b   :  { %v284_v62 = vpop.f32.mrf.mxu3 }
 0x11c   :  { %327 = vrot.lane.b32.xlu2 %v281_v60, %s460_s5  ;;  %329 = vrot.lane.b32.xlu0 %v284_v62, %s460_s5 }
 0x11f   :  { %325 = vrot.lane.b32.xlu1 %v278_v57, %s460_s5  ;;  %v86_v10 = vpop.f32.mrf.mxu0 }
 0x127   :  { %v89_v18 = vpop.f32.mrf.mxu0 }
 0x155   :  { %v308_v63 = vpop.permute.xlu2 %307 }
 0x15d   :  { %v294_v3 = vpop.permute.xlu2 %293 }
 0x15e   :  { %v337_v23 = vsel %vm335_vm2, %v83_v7, %v294_v3 }
 0x167   :  { %v292_v1 = vpop.permute.xlu1 %291 }
 0x168   :  { %v336_v2 = vsel %vm335_vm2, %v80_v0, %v292_v1 }
 0x169   :  { %v340_v4 = vsel %vm50_vm0, %v336_v2, %v308_v63 }
 0x16e   :  { %v314_v8 = vpop.permute.xlu2 %313 }
 0x176   :  { %v324_v5 = vpop.permute.xlu0 %323  ;;  %v328_v14 = vpop.permute.xlu2 %327 }
 0x177   :  { %v345_v6 = vsel %vm344_vm3, %v340_v4, %v324_v5 }
 0x178   :  { %349 = vst [vmem:[#allocation2] sm:$0xff] %v345_v6 }
 0x17e   :  { %v310_v9 = vpop.permute.xlu0 %309  ;;  %v312_v11 = vpop.permute.xlu1 %311 }
 0x17f   :  { %v341_v24 = vsel %vm50_vm0, %v337_v23, %v310_v9 }
 0x186   :  { %v296_v12 = vpop.permute.xlu0 %295 }
 0x187   :  { %v338_v13 = vsel %vm335_vm2, %v86_v10, %v296_v12 }
 0x188   :  { %v342_v15 = vsel %vm50_vm0, %v338_v13, %v312_v11 }
 0x189   :  { %v347_v16 = vsel %vm344_vm3, %v342_v15, %v328_v14  ;;  %v298_v17 = vpop.permute.xlu1 %297 }
 0x18a   :  { %351 = vst [vmem:[#allocation2 + $0x10] sm:$0xff] %v347_v16  ;;  %v339_v19 = vsel %vm335_vm2, %v89_v18, %v298_v17 }
 0x18b   :  { %v343_v20 = vsel %vm50_vm0, %v339_v19, %v314_v8 }
 0x18e   :  { %v330_v21 = vpop.permute.xlu0 %329 }
 0x18f   :  { %v348_v22 = vsel %vm344_vm3, %v343_v20, %v330_v21 }
 0x190   :  { %352 = vst [vmem:[#allocation2 + $0x18] sm:$0xff] %v348_v22 }
 0x191   :  { %v326_v25 = vpop.permute.xlu1 %325 }
 0x192   :  { %v346_v26 = vsel %vm344_vm3, %v341_v24, %v326_v25 }
 0x193   :  { %350 = vst [vmem:[#allocation2 + $0x8] sm:$0xff] %v346_v26 }
 0x194   :  { %365 = dma.vmem_to_hbm [thread:$0]  %s358_s7, 512, %s360_s10, [#allocation3], %s462_s11, %s462_s11, %s463_s12  }
 0x195   :  { %451 = dma.done.wait [#allocation3], 512  }
 0x196   :  { %452 = vsyncadd [#allocation3], 4294966784 }
 0x197   :  { %370 = vsyncpa [#allocation3], 1 }

</bundles_post_ra>
